<compile_context>
chip_gen: v6e
topology: v6e:2x2x1
jax: 0.10.0
libtpu: 0.0.40
codegen_flags: <defaults>
</compile_context>

<pallas_src>
import functools

import jax
import jax.numpy as jnp
import numpy as np
from jax import lax
from jax.experimental import pallas as pl
from jax.experimental.pallas import tpu as pltpu


def _log_sigmoid(x):
    # numerically stable log(sigmoid(x)) = min(x, 0) - log1p(exp(-|x|))
    return jnp.minimum(x, 0.0) - jnp.log1p(jnp.exp(-jnp.abs(x)))


def _cosine_distance_t(a, b, eps=1e-8):
    # a, b: (D, TB) f32 -- feature axis on sublanes, batch rows on lanes.
    # gravlearn DistanceMetrics.COSINE: 1 - cosine_similarity(a, b, dim=1).
    # Single merged rsqrt:  rsqrt(max(na2,eps^2) * max(nb2,eps^2))
    #                       == 1 / (max(||a||,eps) * max(||b||,eps)).
    dot = jnp.sum(a * b, axis=0, keepdims=True)      # (1, TB), lane-dense
    na2 = jnp.sum(a * a, axis=0, keepdims=True)
    nb2 = jnp.sum(b * b, axis=0, keepdims=True)
    inv = lax.rsqrt(jnp.maximum(na2, eps * eps) * jnp.maximum(nb2, eps * eps))
    return 1.0 - dot * inv


def quadlet_loss_kernel(scale_ref, tab_t_ref, iw_ref, ow_ref, inw_ref, onw_ref,
                        out_ref, *, total_batch):
    step = pl.program_id(0)
    scale = scale_ref[0]

    tab_t = tab_t_ref[...]                    # (D, VOCAB), table dtype
    vocab = tab_t.shape[1]
    tile_b = iw_ref.shape[1]

    vocab_iota = lax.broadcasted_iota(jnp.int32, (vocab, tile_b), 0)

    def gather_t(idx_ref):
        # Gathered rows, already transposed to (D, TB): one-hot matmul on MXU.
        # TODO(synk): strictly-f32 tables inherit the MXU's default f32 matmul
        # precision here; use precision=HIGHEST (or hi/lo bf16 split) if exact
        # beyond-bf16-mantissa gather is required.  bf16 tables are exact.
        one_hot = jnp.where(vocab_iota == idx_ref[...], 1.0, 0.0)
        return jnp.dot(tab_t, one_hot.astype(tab_t.dtype),
                       preferred_element_type=jnp.float32)   # (D, TB) f32

    iv = gather_t(iw_ref)
    ov = gather_t(ow_ref)
    inv = gather_t(inw_ref)
    onv = gather_t(onw_ref)

    d_pos = _cosine_distance_t(iv, ov)        # (1, TB)
    d_neg = _cosine_distance_t(inv, onv)

    oloss = _log_sigmoid(-scale * d_pos)
    nloss = _log_sigmoid(-scale * (-d_neg))   # `.neg()` applied to the distance

    # Mask the ragged tail of the last block (out-of-bounds lanes hold garbage
    # indices; the gathered values are finite but meaningless).
    col = step * tile_b + lax.broadcasted_iota(jnp.int32, (1, tile_b), 1)
    contrib = jnp.where(col < total_batch, oloss + nloss, 0.0)

    # Per-tile partial sum to this step's own lane-dense output block; the
    # final reduction / mean happens outside (keeps the grid axis parallel).
    partial = jnp.sum(contrib)
    out_ref[...] = jnp.broadcast_to(partial, out_ref.shape).astype(jnp.float32)


def _round_up(x, m):
    return (x + m - 1) // m * m


def quadlet_loss(scale, emb_table, iword, oword, inword, onword, *, tile_b=1024):
    """Fused QuadletLoss forward.

    scale: scalar (or (1,)) f32; emb_table: (VOCAB, D) f32/bf16;
    iword/oword/inword/onword: (B,) integer index vectors.  Returns f32 loss.
    """
    vocab, d = emb_table.shape
    b = int(iword.shape[0])

    # Batch rows live on the lane axis, so tile_b must be a multiple of 128.
    # Clamp so the tile never exceeds ~half the batch (>= 2 grid tiles once
    # B > 128, so both v7x TensorCores get work) and small batches do not pay
    # for a needlessly large tile.  Last tile may be ragged (masked in-kernel).
    half_b = _round_up(-(-b // 2), 128)
    tile_b = max(128, min(_round_up(tile_b, 128), half_b))
    num_tiles = -(-b // tile_b)

    scale = jnp.asarray(scale, jnp.float32).reshape((1,))
    tab_t = jnp.transpose(emb_table)          # (D, VOCAB); tiny one-off XLA op

    def as_row(w):
        return jnp.asarray(w, jnp.int32).reshape((1, b))

    iw, ow, inw, onw = map(as_row, (iword, oword, inword, onword))

    idx_spec = pl.BlockSpec((1, tile_b), lambda i: (0, i))
    tab_spec = pl.BlockSpec((d, vocab), lambda i: (0, 0))   # grid-invariant

    kernel = functools.partial(quadlet_loss_kernel, total_batch=b)
    partials = pl.pallas_call(
        kernel,
        out_shape=jax.ShapeDtypeStruct((num_tiles, 1, 128), jnp.float32),
        grid_spec=pltpu.PrefetchScalarGridSpec(
            num_scalar_prefetch=0,
            grid=(num_tiles,),
            in_specs=[pl.BlockSpec(memory_space=pltpu.SMEM),   # scale
                      tab_spec, idx_spec, idx_spec, idx_spec, idx_spec],
            out_specs=pl.BlockSpec((1, 1, 128), lambda i: (i, 0, 0)),
        ),
        compiler_params=pltpu.CompilerParams(
            dimension_semantics=("parallel",)),   # independent per-tile partials
    )(scale, tab_t, iw, ow, inw, onw)
    return -jnp.sum(partials[:, 0, 0]) / jnp.float32(b)


def quadlet_loss_ref(scale, emb_table, iword, oword, inword, onword):
    """Pure-JAX reference of the PyTorch forward (f32 math)."""
    def gather(w):
        return jnp.take(emb_table, w, axis=0).astype(jnp.float32)

    ivec, ovec, invec, onvec = map(gather, (iword, oword, inword, onword))

    def cos_dist(a, b):
        dot = jnp.sum(a * b, axis=-1)
        na = jnp.sqrt(jnp.sum(a * a, axis=-1))
        nb = jnp.sqrt(jnp.sum(b * b, axis=-1))
        return 1.0 - dot / (jnp.maximum(na, 1e-8) * jnp.maximum(nb, 1e-8))

    oloss = _log_sigmoid(-scale * cos_dist(ivec, ovec))
    nloss = _log_sigmoid(-scale * (-cos_dist(invec, onvec)))
    return -(oloss + nloss).mean()


if __name__ == "__main__":
    key = jax.random.PRNGKey(0)
    k_emb, k_i, k_o, k_in, k_on = jax.random.split(key, 5)

    VOCAB, D = 64, 128
    # Demo table values are made bf16-representable so the correctness check is
    # independent of the MXU's f32-matmul precision mode (the one-hot gather is
    # then bit-exact in any mode); the bf16 case below uses the same values.
    emb_f32 = jax.random.normal(k_emb, (VOCAB, D), dtype=jnp.float32)
    emb_f32 = emb_f32.astype(jnp.bfloat16).astype(jnp.float32)
    scale = jnp.float32(10.0)

    # (batch, explicit tile_b or None, table dtype):
    #   16              -> single ragged 128-lane tile
    #   300 / tile 256  -> two tiles, ragged last block
    #   300 / bf16      -> auto 2-tile split + bf16 table storage (item 2)
    cases = [(16, None, jnp.float32),
             (300, 256, jnp.float32),
             (300, None, jnp.bfloat16)]

    for B, tb, tdtype in cases:
        iword = jax.random.randint(k_i, (B,), 0, VOCAB, dtype=jnp.int32)
        oword = jax.random.randint(k_o, (B,), 0, VOCAB, dtype=jnp.int32)
        inword = jax.random.randint(k_in, (B,), 0, VOCAB, dtype=jnp.int32)
        onword = jax.random.randint(k_on, (B,), 0, VOCAB, dtype=jnp.int32)

        table = emb_f32.astype(tdtype)
        kwargs = {} if tb is None else {"tile_b": tb}
        loss = quadlet_loss(scale, table, iword, oword, inword, onword, **kwargs)
        loss = jax.block_until_ready(loss)

        ref = quadlet_loss_ref(scale, table, iword, oword, inword, onword)
        np.testing.assert_allclose(np.asarray(loss), np.asarray(ref),
                                   rtol=1e-5, atol=1e-5)

    print("KERNEL_OK")
</pallas_src>

<mosaic_0001>
module attributes {stable_mosaic.version = 11 : i64} {
  func.func @quadlet_loss_kernel(%arg0: i32, %arg1: memref<1xf32, #tpu.memory_space<smem>>, %arg2: memref<128x64xf32, #tpu.memory_space<vmem>>, %arg3: memref<1x128xi32, #tpu.memory_space<vmem>>, %arg4: memref<1x128xi32, #tpu.memory_space<vmem>>, %arg5: memref<1x128xi32, #tpu.memory_space<vmem>>, %arg6: memref<1x128xi32, #tpu.memory_space<vmem>>, %arg7: memref<1x1x128xf32, #tpu.memory_space<vmem>>) attributes {dimension_semantics = [#tpu.dimension_semantics<parallel>], iteration_bounds = array<i64: 1>, scalar_prefetch = 0 : i64, scratch_operands = 0 : i64, tpu.core_type = #tpu.core_type<tc>, window_params = [{transform_indices = @transform_0, window_bounds = array<i64: 1>}, {pipeline_mode = #tpu.pipeline_mode<synchronous>, transform_indices = @transform_1, window_bounds = array<i64: 128, 64>}, {transform_indices = @transform_2, window_bounds = array<i64: 1, 128>}, {transform_indices = @transform_3, window_bounds = array<i64: 1, 128>}, {transform_indices = @transform_4, window_bounds = array<i64: 1, 128>}, {transform_indices = @transform_5, window_bounds = array<i64: 1, 128>}, {transform_indices = @transform_6, window_bounds = array<i64: 1, 1, 128>}]} {
    %c0 = arith.constant 0 : index
    %0 = memref.load %arg1[%c0] : memref<1xf32, #tpu.memory_space<smem>>
    %c0_0 = arith.constant 0 : index
    %c0_1 = arith.constant 0 : index
    %1 = vector.load %arg2[%c0_0, %c0_1] : memref<128x64xf32, #tpu.memory_space<vmem>>, vector<128x64xf32>
    %2 = tpu.iota {dimensions = array<i32: 0>} : vector<64x128xi32>
    %c0_2 = arith.constant 0 : index
    %c0_3 = arith.constant 0 : index
    %3 = vector.load %arg3[%c0_2, %c0_3] : memref<1x128xi32, #tpu.memory_space<vmem>>, vector<1x128xi32>
    %4 = vector.broadcast %3 : vector<1x128xi32> to vector<64x128xi32>
    %5 = arith.cmpi eq, %2, %4 : vector<64x128xi32>
    %cst = arith.constant 1.000000e+00 : f32
    %cst_4 = arith.constant 0.000000e+00 : f32
    %6 = vector.broadcast %cst : f32 to vector<64x128xf32>
    %7 = vector.broadcast %cst_4 : f32 to vector<64x128xf32>
    %8 = arith.select %5, %6, %7 : vector<64x128xi1>, vector<64x128xf32>
    %cst_5 = arith.constant dense<0.000000e+00> : vector<128x128xf32>
    %9 = tpu.matmul %1, %8, %cst_5 {dimension_numbers = #tpu.dot_dimension_numbers<[1], [0], [0], [1], [0, 0, 1, 1], [], []>} : vector<128x64xf32>, vector<64x128xf32>, vector<128x128xf32> -> vector<128x128xf32>
    %c0_6 = arith.constant 0 : index
    %c0_7 = arith.constant 0 : index
    %10 = vector.load %arg4[%c0_6, %c0_7] : memref<1x128xi32, #tpu.memory_space<vmem>>, vector<1x128xi32>
    %11 = vector.broadcast %10 : vector<1x128xi32> to vector<64x128xi32>
    %12 = arith.cmpi eq, %2, %11 : vector<64x128xi32>
    %cst_8 = arith.constant 1.000000e+00 : f32
    %cst_9 = arith.constant 0.000000e+00 : f32
    %13 = vector.broadcast %cst_8 : f32 to vector<64x128xf32>
    %14 = vector.broadcast %cst_9 : f32 to vector<64x128xf32>
    %15 = arith.select %12, %13, %14 : vector<64x128xi1>, vector<64x128xf32>
    %cst_10 = arith.constant dense<0.000000e+00> : vector<128x128xf32>
    %16 = tpu.matmul %1, %15, %cst_10 {dimension_numbers = #tpu.dot_dimension_numbers<[1], [0], [0], [1], [0, 0, 1, 1], [], []>} : vector<128x64xf32>, vector<64x128xf32>, vector<128x128xf32> -> vector<128x128xf32>
    %c0_11 = arith.constant 0 : index
    %c0_12 = arith.constant 0 : index
    %17 = vector.load %arg5[%c0_11, %c0_12] : memref<1x128xi32, #tpu.memory_space<vmem>>, vector<1x128xi32>
    %18 = vector.broadcast %17 : vector<1x128xi32> to vector<64x128xi32>
    %19 = arith.cmpi eq, %2, %18 : vector<64x128xi32>
    %cst_13 = arith.constant 1.000000e+00 : f32
    %cst_14 = arith.constant 0.000000e+00 : f32
    %20 = vector.broadcast %cst_13 : f32 to vector<64x128xf32>
    %21 = vector.broadcast %cst_14 : f32 to vector<64x128xf32>
    %22 = arith.select %19, %20, %21 : vector<64x128xi1>, vector<64x128xf32>
    %cst_15 = arith.constant dense<0.000000e+00> : vector<128x128xf32>
    %23 = tpu.matmul %1, %22, %cst_15 {dimension_numbers = #tpu.dot_dimension_numbers<[1], [0], [0], [1], [0, 0, 1, 1], [], []>} : vector<128x64xf32>, vector<64x128xf32>, vector<128x128xf32> -> vector<128x128xf32>
    %c0_16 = arith.constant 0 : index
    %c0_17 = arith.constant 0 : index
    %24 = vector.load %arg6[%c0_16, %c0_17] : memref<1x128xi32, #tpu.memory_space<vmem>>, vector<1x128xi32>
    %25 = vector.broadcast %24 : vector<1x128xi32> to vector<64x128xi32>
    %26 = arith.cmpi eq, %2, %25 : vector<64x128xi32>
    %cst_18 = arith.constant 1.000000e+00 : f32
    %cst_19 = arith.constant 0.000000e+00 : f32
    %27 = vector.broadcast %cst_18 : f32 to vector<64x128xf32>
    %28 = vector.broadcast %cst_19 : f32 to vector<64x128xf32>
    %29 = arith.select %26, %27, %28 : vector<64x128xi1>, vector<64x128xf32>
    %cst_20 = arith.constant dense<0.000000e+00> : vector<128x128xf32>
    %30 = tpu.matmul %1, %29, %cst_20 {dimension_numbers = #tpu.dot_dimension_numbers<[1], [0], [0], [1], [0, 0, 1, 1], [], []>} : vector<128x64xf32>, vector<64x128xf32>, vector<128x128xf32> -> vector<128x128xf32>
    %31 = arith.mulf %9, %16 : vector<128x128xf32>
    %cst_21 = arith.constant dense<0.000000e+00> : vector<128xf32>
    %32 = vector.multi_reduction <add>, %31, %cst_21 [0] : vector<128x128xf32> to vector<128xf32>
    %33 = vector.shape_cast %32 : vector<128xf32> to vector<1x128xf32>
    %34 = arith.mulf %9, %9 : vector<128x128xf32>
    %cst_22 = arith.constant dense<0.000000e+00> : vector<128xf32>
    %35 = vector.multi_reduction <add>, %34, %cst_22 [0] : vector<128x128xf32> to vector<128xf32>
    %36 = vector.shape_cast %35 : vector<128xf32> to vector<1x128xf32>
    %37 = arith.mulf %16, %16 : vector<128x128xf32>
    %cst_23 = arith.constant dense<0.000000e+00> : vector<128xf32>
    %38 = vector.multi_reduction <add>, %37, %cst_23 [0] : vector<128x128xf32> to vector<128xf32>
    %39 = vector.shape_cast %38 : vector<128xf32> to vector<1x128xf32>
    %cst_24 = arith.constant 1.000000e-16 : f32
    %40 = vector.broadcast %cst_24 : f32 to vector<1x128xf32>
    %41 = arith.maximumf %36, %40 : vector<1x128xf32>
    %cst_25 = arith.constant 1.000000e-16 : f32
    %42 = vector.broadcast %cst_25 : f32 to vector<1x128xf32>
    %43 = arith.maximumf %39, %42 : vector<1x128xf32>
    %44 = arith.mulf %41, %43 : vector<1x128xf32>
    %45 = math.rsqrt %44 : vector<1x128xf32>
    %46 = arith.mulf %33, %45 : vector<1x128xf32>
    %cst_26 = arith.constant 1.000000e+00 : f32
    %47 = vector.broadcast %cst_26 : f32 to vector<1x128xf32>
    %48 = arith.subf %47, %46 : vector<1x128xf32>
    %49 = arith.mulf %23, %30 : vector<128x128xf32>
    %cst_27 = arith.constant dense<0.000000e+00> : vector<128xf32>
    %50 = vector.multi_reduction <add>, %49, %cst_27 [0] : vector<128x128xf32> to vector<128xf32>
    %51 = vector.shape_cast %50 : vector<128xf32> to vector<1x128xf32>
    %52 = arith.mulf %23, %23 : vector<128x128xf32>
    %cst_28 = arith.constant dense<0.000000e+00> : vector<128xf32>
    %53 = vector.multi_reduction <add>, %52, %cst_28 [0] : vector<128x128xf32> to vector<128xf32>
    %54 = vector.shape_cast %53 : vector<128xf32> to vector<1x128xf32>
    %55 = arith.mulf %30, %30 : vector<128x128xf32>
    %cst_29 = arith.constant dense<0.000000e+00> : vector<128xf32>
    %56 = vector.multi_reduction <add>, %55, %cst_29 [0] : vector<128x128xf32> to vector<128xf32>
    %57 = vector.shape_cast %56 : vector<128xf32> to vector<1x128xf32>
    %cst_30 = arith.constant 1.000000e-16 : f32
    %58 = vector.broadcast %cst_30 : f32 to vector<1x128xf32>
    %59 = arith.maximumf %54, %58 : vector<1x128xf32>
    %cst_31 = arith.constant 1.000000e-16 : f32
    %60 = vector.broadcast %cst_31 : f32 to vector<1x128xf32>
    %61 = arith.maximumf %57, %60 : vector<1x128xf32>
    %62 = arith.mulf %59, %61 : vector<1x128xf32>
    %63 = math.rsqrt %62 : vector<1x128xf32>
    %64 = arith.mulf %51, %63 : vector<1x128xf32>
    %cst_32 = arith.constant 1.000000e+00 : f32
    %65 = vector.broadcast %cst_32 : f32 to vector<1x128xf32>
    %66 = arith.subf %65, %64 : vector<1x128xf32>
    %cst_33 = arith.constant 0.000000e+00 : f32
    %67 = arith.subf %cst_33, %0 : f32
    %68 = vector.broadcast %67 : f32 to vector<1x128xf32>
    %69 = arith.mulf %68, %48 : vector<1x128xf32>
    %cst_34 = arith.constant 0.000000e+00 : f32
    %70 = vector.broadcast %cst_34 : f32 to vector<1x128xf32>
    %71 = arith.minimumf %69, %70 : vector<1x128xf32>
    %72 = math.absf %69 : vector<1x128xf32>
    %cst_35 = arith.constant 0.000000e+00 : f32
    %73 = vector.broadcast %cst_35 : f32 to vector<1x128xf32>
    %74 = arith.subf %73, %72 : vector<1x128xf32>
    %75 = math.exp %74 : vector<1x128xf32>
    %76 = math.log1p %75 : vector<1x128xf32>
    %77 = arith.subf %71, %76 : vector<1x128xf32>
    %cst_36 = arith.constant 0.000000e+00 : f32
    %78 = arith.subf %cst_36, %0 : f32
    %cst_37 = arith.constant 0.000000e+00 : f32
    %79 = vector.broadcast %cst_37 : f32 to vector<1x128xf32>
    %80 = arith.subf %79, %66 : vector<1x128xf32>
    %81 = vector.broadcast %78 : f32 to vector<1x128xf32>
    %82 = arith.mulf %81, %80 : vector<1x128xf32>
    %cst_38 = arith.constant 0.000000e+00 : f32
    %83 = vector.broadcast %cst_38 : f32 to vector<1x128xf32>
    %84 = arith.minimumf %82, %83 : vector<1x128xf32>
    %85 = math.absf %82 : vector<1x128xf32>
    %cst_39 = arith.constant 0.000000e+00 : f32
    %86 = vector.broadcast %cst_39 : f32 to vector<1x128xf32>
    %87 = arith.subf %86, %85 : vector<1x128xf32>
    %88 = math.exp %87 : vector<1x128xf32>
    %89 = math.log1p %88 : vector<1x128xf32>
    %90 = arith.subf %84, %89 : vector<1x128xf32>
    %c128_i32 = arith.constant 128 : i32
    %91 = arith.muli %arg0, %c128_i32 : i32
    %92 = tpu.iota {dimensions = array<i32: 1>} : vector<1x128xi32>
    %93 = vector.broadcast %91 : i32 to vector<1x128xi32>
    %94 = arith.addi %93, %92 : vector<1x128xi32>
    %c16_i32 = arith.constant 16 : i32
    %95 = vector.broadcast %c16_i32 : i32 to vector<1x128xi32>
    %96 = arith.cmpi slt, %94, %95 : vector<1x128xi32>
    %97 = arith.addf %77, %90 : vector<1x128xf32>
    %cst_40 = arith.constant 0.000000e+00 : f32
    %98 = vector.broadcast %cst_40 : f32 to vector<1x128xf32>
    %99 = arith.select %96, %97, %98 : vector<1x128xi1>, vector<1x128xf32>
    %100 = vector.shape_cast %99 : vector<1x128xf32> to vector<1x1x128xf32>
    %cst_41 = arith.constant dense<0.000000e+00> : vector<1xf32>
    %101 = vector.multi_reduction <add>, %100, %cst_41 [1, 2] : vector<1x1x128xf32> to vector<1xf32>
    %102 = vector.shape_cast %101 : vector<1xf32> to vector<1x1x1xf32>
    %103 = vector.extract %102[0, 0, 0] : f32 from vector<1x1x1xf32>
    %104 = vector.broadcast %103 : f32 to vector<1x1x128xf32>
    %c0_42 = arith.constant 0 : index
    %c0_43 = arith.constant 0 : index
    %c0_44 = arith.constant 0 : index
    %105 = vector.load %arg7[%c0_42, %c0_43, %c0_44] : memref<1x1x128xf32, #tpu.memory_space<vmem>>, vector<1x1x128xf32>
    tpu.vector_store %arg7[%c0_42, %c0_43, %c0_44], %104 {strides = array<i32>} : memref<1x1x128xf32, #tpu.memory_space<vmem>>, vector<1x1x128xf32>,
    return
  }
  func.func @transform_0(%arg0: i32) -> i32 {
    %c0_i32 = arith.constant 0 : i32
    %c0_i32_0 = arith.constant 0 : i32
    return %c0_i32 : i32
  }
  func.func @transform_1(%arg0: i32) -> (i32, i32) {
    %c0_i32 = arith.constant 0 : i32
    %c0_i32_0 = arith.constant 0 : i32
    %c0_i32_1 = arith.constant 0 : i32
    return %c0_i32, %c0_i32_0 : i32, i32
  }
  func.func @transform_2(%arg0: i32) -> (i32, i32) {
    %c0_i32 = arith.constant 0 : i32
    %c0_i32_0 = arith.constant 0 : i32
    return %c0_i32, %arg0 : i32, i32
  }
  func.func @transform_3(%arg0: i32) -> (i32, i32) {
    %c0_i32 = arith.constant 0 : i32
    %c0_i32_0 = arith.constant 0 : i32
    return %c0_i32, %arg0 : i32, i32
  }
  func.func @transform_4(%arg0: i32) -> (i32, i32) {
    %c0_i32 = arith.constant 0 : i32
    %c0_i32_0 = arith.constant 0 : i32
    return %c0_i32, %arg0 : i32, i32
  }
  func.func @transform_5(%arg0: i32) -> (i32, i32) {
    %c0_i32 = arith.constant 0 : i32
    %c0_i32_0 = arith.constant 0 : i32
    return %c0_i32, %arg0 : i32, i32
  }
  func.func @transform_6(%arg0: i32) -> (i32, i32, i32) {
    %c0_i32 = arith.constant 0 : i32
    %c0_i32_0 = arith.constant 0 : i32
    %c0_i32_1 = arith.constant 0 : i32
    return %arg0, %c0_i32, %c0_i32_0 : i32, i32, i32
  }
}

</mosaic_0001>

<bundles_post_ra>
// kernel: tpu_custom_call.1
= control target key start
LH: loop header
LB: loop body
LE: loop exit
PB: predicated region body
PF: predicated region fallthrough
CT: control target
= control target key end

     0   :  { %v42_v0 = vlaneseq  ;;  %vm72_vm0 = vcmask 523264   ;;  %v1462_v9 = vmov 1.0   ;;  %s1870_s0 = inlined_call_operand.<no memory space> [shape: f32[1], index: 0, kind: input, shape index: {}]   ;;  %s1871_s1 = inlined_call_operand.vmem [shape: f32[128,64], index: 1, kind: input, shape index: {}]   ;;  %s1872_s2 = inlined_call_operand.vmem [shape: s32[1,16], index: 2, kind: input, shape index: {}]   ;;  %s1873_s3 = inlined_call_operand.vmem [shape: s32[1,16], index: 3, kind: input, shape index: {}]   ;;  %s1874_s4 = inlined_call_operand.vmem [shape: s32[1,16], index: 4, kind: input, shape index: {}]   ;;  %s1875_s5 = inlined_call_operand.vmem [shape: s32[1,16], index: 5, kind: input, shape index: {}]   ;;  %s1876_s6 = inlined_call_operand.hbm [shape: f32[1,1,128], index: 6, kind: output, shape index: {}]  }
   0x1   :  { %v1502_v1 = vld [vmem:[%s1871_s1] sm:$0xff] }
   0x2   :  { %v1505_v2 = vshrl.u32 %v42_v0, 7  ;;  %1280 = vmatprep.mubr.msk.f32.mxu0 %vm72_vm0, %v1502_v1  ;;  %1320 = vmatprep.mubr.msk.f32.mxu1 %vm72_vm0, %v1502_v1  ;;  %v1514_v3 = vld [vmem:[%s1872_s2] ss:$0 sm:$0xff] }
   0x3   :  { %v1519_v4 = vld [vmem:[%s1873_s3] ss:$0 sm:$0xff] }
   0x4   :  { %v1522_v5 = vadd.s32 56, %v1505_v2  ;;  %v1525_v6 = vadd.s32 48, %v1505_v2  ;;  %v1528_v7 = vadd.s32 40, %v1505_v2  ;;  %v1531_v8 = vadd.s32 32, %v1505_v2 }
   0x6   :  { %vm63_vm1 = vcmp.eq.s32.totalorder %v1522_v5, %v1514_v3  ;;  %vm278_vm2 = vcmp.eq.s32.totalorder %v1522_v5, %v1519_v4  ;;  %vm62_vm3 = vcmp.eq.s32.totalorder %v1525_v6, %v1514_v3  ;;  %vm277_vm4 = vcmp.eq.s32.totalorder %v1525_v6, %v1519_v4 }
   0x7   :  { %1264 = vmatprep.subr.msk.mxu0 %vm63_vm1, %v1462_v9  ;;  %1304 = vmatprep.subr.msk.mxu1 %vm278_vm2, %v1462_v9 }
   0x8   :  { %12 = vsyncpa [#allocation4], 0  ;;  %1265 = vmatpush3.msk.msra.mxu0 %vm63_vm1, %v1462_v9  ;;  %1305 = vmatpush3.msk.msra.mxu1 %vm278_vm2, %v1462_v9  ;;  %vm61_vm5 = vcmp.eq.s32.totalorder %v1528_v7, %v1514_v3  ;;  %vm276_vm6 = vcmp.eq.s32.totalorder %v1528_v7, %v1519_v4  ;;  %v1550_v10 = vadd.s32 24, %v1505_v2  ;;  %vm60_vm7 = vcmp.eq.s32.totalorder %v1531_v8, %v1514_v3  ;;  %v1601_v13 = vld [vmem:[%s1874_s4] ss:$0 sm:$0xff]  ;;  %v1615_v15 = vld [vmem:[%s1871_s1 + $0x8] sm:$0xff] }
   0x9   :  { %1266 = vmatprep.subr.msk.mxu0 %vm62_vm3, %v1462_v9  ;;  %1306 = vmatprep.subr.msk.mxu1 %vm277_vm4, %v1462_v9  ;;  %vm275_vm8 = vcmp.eq.s32.totalorder %v1531_v8, %v1519_v4  ;;  %v1561_v11 = vadd.s32 16, %v1505_v2  ;;  %v1572_v12 = vadd.s32 8, %v1505_v2  ;;  %vm56_vm15 = vcmp.eq.s32.totalorder %v1505_v2, %v1514_v3  ;;  %v1606_v14 = vld [vmem:[%s1875_s5] ss:$0 sm:$0xff]  ;;  %v1632_v16 = vld [vmem:[%s1871_s1 + $0x10] sm:$0xff]  ;;  %v1639_v17 = vld [vmem:[%s1871_s1 + $0x18] sm:$0xff] }
   0xa   :  { %1267 = vmatpush3.msk.msra.mxu0 %vm62_vm3, %v1462_v9  ;;  %1307 = vmatpush3.msk.msra.mxu1 %vm277_vm4, %v1462_v9  ;;  %vm59_vm9 = vcmp.eq.s32.totalorder %v1550_v10, %v1514_v3  ;;  %vm274_vm10 = vcmp.eq.s32.totalorder %v1550_v10, %v1519_v4  ;;  %vm271_vm1 = vcmp.eq.s32.totalorder %v1505_v2, %v1519_v4  ;;  %v1658_v18 = vld [vmem:[%s1871_s1 + $0x20] sm:$0xff]  ;;  %v1665_v19 = vld [vmem:[%s1871_s1 + $0x28] sm:$0xff]  ;;  %v1684_v20 = vld [vmem:[%s1871_s1 + $0x30] sm:$0xff]  ;;  %s998_s5 = ssub.f32 0.0, %s1870_s0  ;;  %s1463_s0 = smov [#allocation3]  }
   0xb   :  { %1268 = vmatprep.subr.msk.mxu0 %vm61_vm5, %v1462_v9  ;;  %1308 = vmatprep.subr.msk.mxu1 %vm276_vm6, %v1462_v9  ;;  %vm58_vm11 = vcmp.eq.s32.totalorder %v1561_v11, %v1514_v3  ;;  %vm273_vm12 = vcmp.eq.s32.totalorder %v1561_v11, %v1519_v4  ;;  %vm57_vm13 = vcmp.eq.s32.totalorder %v1572_v12, %v1514_v3  ;;  %v1691_v21 = vld [vmem:[%s1871_s1 + $0x38] sm:$0xff]  ;;  %v1710_v22 = vld [vmem:[%s1871_s1 + $0x40] sm:$0xff]  ;;  %v1717_v23 = vld [vmem:[%s1871_s1 + $0x48] sm:$0xff]  ;;  %s1060_s7 = sshll.u32 %s1463_s0, 4  ;;  %s1061_s7 = int_to_ptr.vmem [resolvable:$true] %s1060_s7 }
   0xc   :  { %1269 = vmatpush3.msk.msra.mxu0 %vm61_vm5, %v1462_v9  ;;  %1309 = vmatpush3.msk.msra.mxu1 %vm276_vm6, %v1462_v9  ;;  %vm272_vm14 = vcmp.eq.s32.totalorder %v1572_v12, %v1519_v4  ;;  %vm444_vm2 = vcmp.eq.s32.totalorder %v1522_v5, %v1601_v13  ;;  %vm610_vm3 = vcmp.eq.s32.totalorder %v1522_v5, %v1606_v14  ;;  %v36_v24 = vld [vmem:[%s1871_s1 + $0x50] sm:$0xff]  ;;  %v37_v25 = vld [vmem:[%s1871_s1 + $0x58] sm:$0xff]  ;;  %v38_v26 = vld [vmem:[%s1871_s1 + $0x60] sm:$0xff]  ;;  %s1440_s9 = scalar_lea.vmem %s1061_s7, 16  ;;  %s1444_s10 = scalar_lea.vmem %s1061_s7, 32 }
   0xd   :  { %1270 = vmatprep.subr.msk.mxu0 %vm60_vm7, %v1462_v9  ;;  %1310 = vmatprep.subr.msk.mxu1 %vm275_vm8, %v1462_v9  ;;  %vm443_vm4 = vcmp.eq.s32.totalorder %v1525_v6, %v1601_v13  ;;  %vm609_vm5 = vcmp.eq.s32.totalorder %v1525_v6, %v1606_v14  ;;  %vm442_vm6 = vcmp.eq.s32.totalorder %v1528_v7, %v1601_v13  ;;  %v39_v27 = vld [vmem:[%s1871_s1 + $0x68] sm:$0xff]  ;;  %v40_v28 = vld [vmem:[%s1871_s1 + $0x70] sm:$0xff]  ;;  %v41_v29 = vld [vmem:[%s1871_s1 + $0x78] sm:$0xff]  ;;  %p1441_p0 = scmp.ne.s32.totalorder %s1061_s7, %s1440_s9  ;;  %p1445_p1 = scmp.lt.s32.totalorder %s1061_s7, %s1061_s7 }
   0xe   :  { %1271 = vmatpush3.msk.msra.mxu0 %vm60_vm7, %v1462_v9  ;;  %1311 = vmatpush3.msk.msra.mxu1 %vm275_vm8, %v1462_v9  ;;  %vm608_vm7 = vcmp.eq.s32.totalorder %v1528_v7, %v1606_v14  ;;  %vm441_vm8 = vcmp.eq.s32.totalorder %v1531_v8, %v1601_v13  ;;  %p1446_p2 = scmp.lt.s32.totalorder %s1444_s10, %s1440_s9 }
   0xf   :  { %1272 = vmatprep.subr.msk.mxu0 %vm59_vm9, %v1462_v9  ;;  %1312 = vmatprep.subr.msk.mxu1 %vm274_vm10, %v1462_v9 }
  0x10   :  { %1273 = vmatpush3.msk.msra.mxu0 %vm59_vm9, %v1462_v9  ;;  %1313 = vmatpush3.msk.msra.mxu1 %vm274_vm10, %v1462_v9  ;;  %vm607_vm9 = vcmp.eq.s32.totalorder %v1531_v8, %v1606_v14  ;;  %vm440_vm10 = vcmp.eq.s32.totalorder %v1550_v10, %v1601_v13  ;;  %p1447_p3 = por %p1446_p2, %p1445_p1 }
  0x11   :  { %1274 = vmatprep.subr.msk.mxu0 %vm58_vm11, %v1462_v9  ;;  %1314 = vmatprep.subr.msk.mxu1 %vm273_vm12, %v1462_v9 }
  0x12   :  { %1275 = vmatpush3.msk.msra.mxu0 %vm58_vm11, %v1462_v9  ;;  %1315 = vmatpush3.msk.msra.mxu1 %vm273_vm12, %v1462_v9  ;;  %vm606_vm11 = vcmp.eq.s32.totalorder %v1550_v10, %v1606_v14  ;;  %vm439_vm12 = vcmp.eq.s32.totalorder %v1561_v11, %v1601_v13  ;;  %p1448_p4 = pnand %p1447_p3, %p1441_p0 }
  0x13   :  { %1276 = vmatprep.subr.msk.mxu0 %vm57_vm13, %v1462_v9  ;;  %1316 = vmatprep.subr.msk.mxu1 %vm272_vm14, %v1462_v9 }
  0x14   :  { %1277 = vmatpush3.msk.msra.mxu0 %vm57_vm13, %v1462_v9  ;;  %1317 = vmatpush3.msk.msra.mxu1 %vm272_vm14, %v1462_v9  ;;  %vm605_vm13 = vcmp.eq.s32.totalorder %v1561_v11, %v1606_v14  ;;  %vm438_vm14 = vcmp.eq.s32.totalorder %v1572_v12, %v1601_v13 }
  0x15   :  { %1278 = vmatprep.subr.msk.mxu0 %vm56_vm15, %v1462_v9  ;;  %1318 = vmatprep.subr.msk.mxu1 %vm271_vm1, %v1462_v9 }
  0x16   :  { %1279 = vmatpush3.msk.msra.mxu0 %vm56_vm15, %v1462_v9  ;;  %1319 = vmatpush3.msk.msra.mxu1 %vm271_vm1, %v1462_v9  ;;  %vm604_vm15 = vcmp.eq.s32.totalorder %v1572_v12, %v1606_v14  ;;  %vm437_vm1 = vcmp.eq.s32.totalorder %v1505_v2, %v1601_v13 }
  0x17   :  { %1281 = vmatmul.mubr.msk.f32.vlgmr.msra.gmra.mxu0 %vm72_vm0, %v1615_v15  ;;  %1321 = vmatmul.mubr.msk.f32.vlgmr.msra.gmra.mxu1 %vm72_vm0, %v1615_v15 }
  0x18   :  { %1344 = vmatprep.subr.msk.mxu0 %vm444_vm2, %v1462_v9  ;;  %1384 = vmatprep.subr.msk.mxu1 %vm610_vm3, %v1462_v9 }
  0x19   :  { %1345 = vmatpush3.msk.msra.mxu0 %vm444_vm2, %v1462_v9  ;;  %1385 = vmatpush3.msk.msra.mxu1 %vm610_vm3, %v1462_v9  ;;  %vm603_vm2 = vcmp.eq.s32.totalorder %v1505_v2, %v1606_v14 }
  0x1a   :  { %1283 = vmatprep.mubr.msk.f32.mxu0 %vm72_vm0, %v1632_v16  ;;  %1323 = vmatprep.mubr.msk.f32.mxu1 %vm72_vm0, %v1632_v16 }
  0x1b   :  { %1284 = vmatmul.mubr.msk.f32.gmra.mxu0 %vm72_vm0, %v1639_v17  ;;  %1324 = vmatmul.mubr.msk.f32.gmra.mxu1 %vm72_vm0, %v1639_v17 }
  0x1c   :  { %1346 = vmatprep.subr.msk.mxu0 %vm443_vm4, %v1462_v9  ;;  %1386 = vmatprep.subr.msk.mxu1 %vm609_vm5, %v1462_v9 }
  0x1d   :  { %1347 = vmatpush3.msk.msra.mxu0 %vm443_vm4, %v1462_v9  ;;  %1387 = vmatpush3.msk.msra.mxu1 %vm609_vm5, %v1462_v9  ;;  %vm1041_vm5 = vcmask 1040384  }
  0x1e   :  { %1286 = vmatprep.mubr.msk.f32.mxu0 %vm72_vm0, %v1658_v18  ;;  %1326 = vmatprep.mubr.msk.f32.mxu1 %vm72_vm0, %v1658_v18 }
  0x1f   :  { %1287 = vmatmul.mubr.msk.f32.gmra.mxu0 %vm72_vm0, %v1665_v19  ;;  %1327 = vmatmul.mubr.msk.f32.gmra.mxu1 %vm72_vm0, %v1665_v19 }
  0x20   :  { %1348 = vmatprep.subr.msk.mxu0 %vm442_vm6, %v1462_v9  ;;  %1388 = vmatprep.subr.msk.mxu1 %vm608_vm7, %v1462_v9 }
  0x21   :  { %1349 = vmatpush3.msk.msra.mxu0 %vm442_vm6, %v1462_v9  ;;  %1389 = vmatpush3.msk.msra.mxu1 %vm608_vm7, %v1462_v9 }
  0x22   :  { %1289 = vmatprep.mubr.msk.f32.mxu0 %vm72_vm0, %v1684_v20  ;;  %1329 = vmatprep.mubr.msk.f32.mxu1 %vm72_vm0, %v1684_v20 }
  0x23   :  { %1290 = vmatmul.mubr.msk.f32.gmra.mxu0 %vm72_vm0, %v1691_v21  ;;  %1330 = vmatmul.mubr.msk.f32.gmra.mxu1 %vm72_vm0, %v1691_v21 }
  0x24   :  { %1350 = vmatprep.subr.msk.mxu0 %vm441_vm8, %v1462_v9  ;;  %1390 = vmatprep.subr.msk.mxu1 %vm607_vm9, %v1462_v9 }
  0x25   :  { %1351 = vmatpush3.msk.msra.mxu0 %vm441_vm8, %v1462_v9  ;;  %1391 = vmatpush3.msk.msra.mxu1 %vm607_vm9, %v1462_v9 }
  0x26   :  { %1292 = vmatprep.mubr.msk.f32.mxu0 %vm72_vm0, %v1710_v22  ;;  %1332 = vmatprep.mubr.msk.f32.mxu1 %vm72_vm0, %v1710_v22 }
  0x27   :  { %1293 = vmatmul.mubr.msk.f32.gmra.mxu0 %vm72_vm0, %v1717_v23  ;;  %1333 = vmatmul.mubr.msk.f32.gmra.mxu1 %vm72_vm0, %v1717_v23 }
  0x28   :  { %1352 = vmatprep.subr.msk.mxu0 %vm440_vm10, %v1462_v9  ;;  %1392 = vmatprep.subr.msk.mxu1 %vm606_vm11, %v1462_v9 }
  0x29   :  { %1353 = vmatpush3.msk.msra.mxu0 %vm440_vm10, %v1462_v9  ;;  %1393 = vmatpush3.msk.msra.mxu1 %vm606_vm11, %v1462_v9 }
  0x2a   :  { %1295 = vmatprep.mubr.msk.f32.mxu0 %vm72_vm0, %v36_v24  ;;  %1335 = vmatprep.mubr.msk.f32.mxu1 %vm72_vm0, %v36_v24 }
  0x2b   :  { %1296 = vmatmul.mubr.msk.f32.gmra.mxu0 %vm72_vm0, %v37_v25  ;;  %1336 = vmatmul.mubr.msk.f32.gmra.mxu1 %vm72_vm0, %v37_v25 }
  0x2c   :  { %1354 = vmatprep.subr.msk.mxu0 %vm439_vm12, %v1462_v9  ;;  %1394 = vmatprep.subr.msk.mxu1 %vm605_vm13, %v1462_v9 }
  0x2d   :  { %1355 = vmatpush3.msk.msra.mxu0 %vm439_vm12, %v1462_v9  ;;  %1395 = vmatpush3.msk.msra.mxu1 %vm605_vm13, %v1462_v9 }
  0x2e   :  { %1298 = vmatprep.mubr.msk.f32.mxu0 %vm72_vm0, %v38_v26  ;;  %1338 = vmatprep.mubr.msk.f32.mxu1 %vm72_vm0, %v38_v26 }
  0x2f   :  { %1299 = vmatmul.mubr.msk.f32.gmra.mxu0 %vm72_vm0, %v39_v27  ;;  %1339 = vmatmul.mubr.msk.f32.gmra.mxu1 %vm72_vm0, %v39_v27 }
  0x30   :  { %1356 = vmatprep.subr.msk.mxu0 %vm438_vm14, %v1462_v9  ;;  %1396 = vmatprep.subr.msk.mxu1 %vm604_vm15, %v1462_v9 }
  0x31   :  { %1357 = vmatpush3.msk.msra.mxu0 %vm438_vm14, %v1462_v9  ;;  %1397 = vmatpush3.msk.msra.mxu1 %vm604_vm15, %v1462_v9 }
  0x32   :  { %1301 = vmatprep.mubr.msk.f32.mxu0 %vm72_vm0, %v40_v28  ;;  %1341 = vmatprep.mubr.msk.f32.mxu1 %vm72_vm0, %v40_v28 }
  0x33   :  { %1302 = vmatmul.mubr.msk.f32.gmra.mxu0 %vm72_vm0, %v41_v29  ;;  %1342 = vmatmul.mubr.msk.f32.gmra.mxu1 %vm72_vm0, %v41_v29 }
  0x34   :  { %1358 = vmatprep.subr.msk.mxu0 %vm437_vm1, %v1462_v9  ;;  %1398 = vmatprep.subr.msk.mxu1 %vm603_vm2, %v1462_v9 }
  0x35   :  { %1359 = vmatpush3.msk.msra.mxu0 %vm437_vm1, %v1462_v9  ;;  %1399 = vmatpush3.msk.msra.mxu1 %vm603_vm2, %v1462_v9 }
  0x36   :  { %1360 = vmatprep.mubr.msk.f32.mxu0 %vm72_vm0, %v1502_v1  ;;  %1400 = vmatprep.mubr.msk.f32.mxu1 %vm72_vm0, %v1502_v1 }
  0x37   :  { %1361 = vmatmul.mubr.msk.f32.vlgmr.msra.gmra.mxu0 %vm72_vm0, %v1615_v15  ;;  %1401 = vmatmul.mubr.msk.f32.vlgmr.msra.gmra.mxu1 %vm72_vm0, %v1615_v15 }
  0x38   :  { %1363 = vmatprep.mubr.msk.f32.mxu0 %vm72_vm0, %v1632_v16  ;;  %1403 = vmatprep.mubr.msk.f32.mxu1 %vm72_vm0, %v1632_v16 }
  0x3b   :  { %1364 = vmatmul.mubr.msk.f32.gmra.mxu0 %vm72_vm0, %v1639_v17  ;;  %1404 = vmatmul.mubr.msk.f32.gmra.mxu1 %vm72_vm0, %v1639_v17 }
  0x3c   :  { %1366 = vmatprep.mubr.msk.f32.mxu0 %vm72_vm0, %v1658_v18  ;;  %1406 = vmatprep.mubr.msk.f32.mxu1 %vm72_vm0, %v1658_v18 }
  0x3f   :  { %1367 = vmatmul.mubr.msk.f32.gmra.mxu0 %vm72_vm0, %v1665_v19  ;;  %1407 = vmatmul.mubr.msk.f32.gmra.mxu1 %vm72_vm0, %v1665_v19 }
  0x40   :  { %1369 = vmatprep.mubr.msk.f32.mxu0 %vm72_vm0, %v1684_v20  ;;  %1409 = vmatprep.mubr.msk.f32.mxu1 %vm72_vm0, %v1684_v20 }
  0x43   :  { %1370 = vmatmul.mubr.msk.f32.gmra.mxu0 %vm72_vm0, %v1691_v21  ;;  %1410 = vmatmul.mubr.msk.f32.gmra.mxu1 %vm72_vm0, %v1691_v21 }
  0x44   :  { %1372 = vmatprep.mubr.msk.f32.mxu0 %vm72_vm0, %v1710_v22  ;;  %1412 = vmatprep.mubr.msk.f32.mxu1 %vm72_vm0, %v1710_v22 }
  0x47   :  { %1373 = vmatmul.mubr.msk.f32.gmra.mxu0 %vm72_vm0, %v1717_v23  ;;  %1413 = vmatmul.mubr.msk.f32.gmra.mxu1 %vm72_vm0, %v1717_v23 }
  0x48   :  { %1375 = vmatprep.mubr.msk.f32.mxu0 %vm72_vm0, %v36_v24  ;;  %1415 = vmatprep.mubr.msk.f32.mxu1 %vm72_vm0, %v36_v24 }
  0x4b   :  { %1376 = vmatmul.mubr.msk.f32.gmra.mxu0 %vm72_vm0, %v37_v25  ;;  %1416 = vmatmul.mubr.msk.f32.gmra.mxu1 %vm72_vm0, %v37_v25 }
  0x4c   :  { %1378 = vmatprep.mubr.msk.f32.mxu0 %vm72_vm0, %v38_v26  ;;  %1418 = vmatprep.mubr.msk.f32.mxu1 %vm72_vm0, %v38_v26 }
  0x4f   :  { %1379 = vmatmul.mubr.msk.f32.gmra.mxu0 %vm72_vm0, %v39_v27  ;;  %1419 = vmatmul.mubr.msk.f32.gmra.mxu1 %vm72_vm0, %v39_v27 }
  0x50   :  { %1381 = vmatprep.mubr.msk.f32.mxu0 %vm72_vm0, %v40_v28  ;;  %1421 = vmatprep.mubr.msk.f32.mxu1 %vm72_vm0, %v40_v28 }
  0x53   :  { %1382 = vmatmul.mubr.msk.f32.gmra.mxu0 %vm72_vm0, %v41_v29  ;;  %1422 = vmatmul.mubr.msk.f32.gmra.mxu1 %vm72_vm0, %v41_v29 }
  0xd7   :  { %v1282_v30 = vpop.f32.mrf.mxu0  ;;  %v1322_v31 = vpop.f32.mrf.mxu1 }
  0xd8   :  { %v802_v37 = vmul.f32 %v1282_v30, %v1282_v30  ;;  %v765_v38 = vmul.f32 %v1322_v31, %v1282_v30  ;;  %v839_v41 = vmul.f32 %v1322_v31, %v1322_v31 }
  0xd9   :  { %v187_v32 = vpop.f32.mrf.mxu0  ;;  %v353_v33 = vpop.f32.mrf.mxu1 }
  0xda   :  { %v801_v34 = vmul.f32 %v187_v32, %v187_v32  ;;  %v764_v35 = vmul.f32 %v353_v33, %v187_v32  ;;  %v838_v36 = vmul.f32 %v353_v33, %v353_v33 }
  0xdb   :  { %v1285_v39 = vpop.f32.mrf.mxu0  ;;  %v1325_v40 = vpop.f32.mrf.mxu1 }
  0xdc   :  { %v817_v42 = vadd.f32 %v802_v37, %v801_v34  ;;  %v780_v43 = vadd.f32 %v765_v38, %v764_v35  ;;  %v854_v46 = vadd.f32 %v839_v41, %v838_v36  ;;  %v804_v50 = vmul.f32 %v1285_v39, %v1285_v39 }
  0xdd   :  { %v197_v44 = vpop.f32.mrf.mxu0  ;;  %v363_v45 = vpop.f32.mrf.mxu1  ;;  %v767_v53 = vmul.f32 %v1325_v40, %v1285_v39  ;;  %v841_v57 = vmul.f32 %v1325_v40, %v1325_v40 }
  0xde   :  { %v803_v47 = vmul.f32 %v197_v44, %v197_v44  ;;  %v766_v48 = vmul.f32 %v363_v45, %v197_v44  ;;  %v840_v49 = vmul.f32 %v363_v45, %v363_v45 }
  0xdf   :  { %v1288_v51 = vpop.f32.mrf.mxu0  ;;  %v1328_v52 = vpop.f32.mrf.mxu1 }
  0xe0   :  { %v818_v54 = vadd.f32 %v817_v42, %v803_v47  ;;  %v781_v55 = vadd.f32 %v780_v43, %v766_v48  ;;  %v855_v56 = vadd.f32 %v854_v46, %v840_v49  ;;  %v806_v5 = vmul.f32 %v1288_v51, %v1288_v51 }
  0xe1   :  { %v207_v58 = vpop.f32.mrf.mxu0  ;;  %v373_v59 = vpop.f32.mrf.mxu1  ;;  %v769_v6 = vmul.f32 %v1328_v52, %v1288_v51  ;;  %v843_v9 = vmul.f32 %v1328_v52, %v1328_v52 }
  0xe2   :  { %v805_v60 = vmul.f32 %v207_v58, %v207_v58  ;;  %v819_v61 = vadd.f32 %v818_v54, %v804_v50  ;;  %v768_v62 = vmul.f32 %v373_v59, %v207_v58  ;;  %v782_v63 = vadd.f32 %v781_v55, %v767_v53 }
  0xe3   :  { %v842_v1 = vmul.f32 %v373_v59, %v373_v59  ;;  %v856_v2 = vadd.f32 %v855_v56, %v841_v57  ;;  %v1291_v3 = vpop.f32.mrf.mxu0  ;;  %v1331_v4 = vpop.f32.mrf.mxu1 }
  0xe4   :  { %v820_v7 = vadd.f32 %v819_v61, %v805_v60  ;;  %v783_v8 = vadd.f32 %v782_v63, %v768_v62  ;;  %v808_v21 = vmul.f32 %v1291_v3, %v1291_v3  ;;  %v845_v24 = vmul.f32 %v1331_v4, %v1331_v4 }
  0xe5   :  { %v857_v10 = vadd.f32 %v856_v2, %v842_v1  ;;  %v217_v11 = vpop.f32.mrf.mxu0  ;;  %v383_v12 = vpop.f32.mrf.mxu1  ;;  %v771_v28 = vmul.f32 %v1331_v4, %v1291_v3 }
  0xe6   :  { %v807_v13 = vmul.f32 %v217_v11, %v217_v11  ;;  %v821_v14 = vadd.f32 %v820_v7, %v806_v5  ;;  %v770_v15 = vmul.f32 %v383_v12, %v217_v11  ;;  %v784_v16 = vadd.f32 %v783_v8, %v769_v6 }
  0xe7   :  { %v844_v17 = vmul.f32 %v383_v12, %v383_v12  ;;  %v858_v18 = vadd.f32 %v857_v10, %v843_v9  ;;  %v1294_v19 = vpop.f32.mrf.mxu0  ;;  %v1334_v20 = vpop.f32.mrf.mxu1 }
  0xe8   :  { %v822_v22 = vadd.f32 %v821_v14, %v807_v13  ;;  %v785_v23 = vadd.f32 %v784_v16, %v770_v15  ;;  %v810_v35 = vmul.f32 %v1294_v19, %v1294_v19  ;;  %v847_v39 = vmul.f32 %v1334_v20, %v1334_v20 }
  0xe9   :  { %v859_v25 = vadd.f32 %v858_v18, %v844_v17  ;;  %v227_v26 = vpop.f32.mrf.mxu0  ;;  %v393_v27 = vpop.f32.mrf.mxu1  ;;  %v773_v56 = vmul.f32 %v1334_v20, %v1294_v19 }
  0xea   :  { %v809_v29 = vmul.f32 %v227_v26, %v227_v26  ;;  %v823_v30 = vadd.f32 %v822_v22, %v808_v21  ;;  %v846_v31 = vmul.f32 %v393_v27, %v393_v27  ;;  %v772_v37 = vmul.f32 %v393_v27, %v227_v26 }
  0xeb   :  { %v860_v32 = vadd.f32 %v859_v25, %v845_v24  ;;  %v1297_v33 = vpop.f32.mrf.mxu0  ;;  %v1337_v34 = vpop.f32.mrf.mxu1  ;;  %v786_v38 = vadd.f32 %v785_v23, %v771_v28 }
  0xec   :  { %v824_v36 = vadd.f32 %v823_v30, %v809_v29  ;;  %v812_v50 = vmul.f32 %v1297_v33, %v1297_v33  ;;  %v849_v52 = vmul.f32 %v1337_v34, %v1337_v34  ;;  %v775_v21 = vmul.f32 %v1337_v34, %v1297_v33 }
  0xed   :  { %v861_v40 = vadd.f32 %v860_v32, %v846_v31  ;;  %v237_v41 = vpop.f32.mrf.mxu0  ;;  %v403_v42 = vpop.f32.mrf.mxu1  ;;  %v787_v49 = vadd.f32 %v786_v38, %v772_v37 }
  0xee   :  { %v811_v43 = vmul.f32 %v237_v41, %v237_v41  ;;  %v825_v44 = vadd.f32 %v824_v36, %v810_v35  ;;  %v848_v45 = vmul.f32 %v403_v42, %v403_v42  ;;  %v774_v63 = vmul.f32 %v403_v42, %v237_v41 }
  0xef   :  { %v862_v46 = vadd.f32 %v861_v40, %v847_v39  ;;  %v1843_v47 = vpop.f32.mrf.mxu0  ;;  %v1845_v48 = vpop.f32.mrf.mxu1  ;;  %v788_v1 = vadd.f32 %v787_v49, %v773_v56 }
  0xf0   :  { %v826_v51 = vadd.f32 %v825_v44, %v811_v43  ;;  %v814_v2 = vmul.f32 %v1843_v47, %v1843_v47  ;;  %v851_v4 = vmul.f32 %v1845_v48, %v1845_v48 }
  0xf1   :  { %v863_v53 = vadd.f32 %v862_v46, %v848_v45  ;;  %v247_v54 = vpop.f32.mrf.mxu0  ;;  %v413_v55 = vpop.f32.mrf.mxu1  ;;  %v789_v14 = vadd.f32 %v788_v1, %v774_v63 }
  0xf2   :  { %v813_v57 = vmul.f32 %v247_v54, %v247_v54  ;;  %v827_v58 = vadd.f32 %v826_v51, %v812_v50  ;;  %v850_v59 = vmul.f32 %v413_v55, %v413_v55  ;;  %v776_v25 = vmul.f32 %v413_v55, %v247_v54 }
  0xf3   :  { %v864_v60 = vadd.f32 %v863_v53, %v849_v52  ;;  %v1847_v61 = vpop.f32.mrf.mxu0  ;;  %v1849_v62 = vpop.f32.mrf.mxu1  ;;  %v790_v30 = vadd.f32 %v789_v14, %v775_v21 }
  0xf4   :  { %v828_v3 = vadd.f32 %v827_v58, %v813_v57  ;;  %v816_v15 = vmul.f32 %v1847_v61, %v1847_v61  ;;  %v853_v17 = vmul.f32 %v1849_v62, %v1849_v62 }
  0xf5   :  { %v865_v5 = vadd.f32 %v864_v60, %v850_v59  ;;  %v257_v6 = vpop.f32.mrf.mxu0  ;;  %v423_v7 = vpop.f32.mrf.mxu1  ;;  %v791_v50 = vadd.f32 %v790_v30, %v776_v25  ;;  %v777_v60 = vmul.f32 %v1845_v48, %v1843_v47 }
  0xf6   :  { %v815_v8 = vmul.f32 %v257_v6, %v257_v6  ;;  %v829_v9 = vadd.f32 %v828_v3, %v814_v2  ;;  %v852_v10 = vmul.f32 %v423_v7, %v423_v7 }
  0xf7   :  { %v866_v11 = vadd.f32 %v865_v5, %v851_v4  ;;  %v1362_v12 = vpop.f32.mrf.mxu0  ;;  %v1402_v13 = vpop.f32.mrf.mxu1  ;;  %v792_v14 = vadd.f32 %v791_v50, %v777_v60 }
  0xf8   :  { %v830_v16 = vadd.f32 %v829_v9, %v815_v8  ;;  %v919_v32 = vmul.f32 %v1362_v12, %v1362_v12  ;;  %v882_v35 = vmul.f32 %v1402_v13, %v1362_v12  ;;  %v956_v37 = vmul.f32 %v1402_v13, %v1402_v13 }
  0xf9   :  { %v867_v18 = vadd.f32 %v866_v11, %v852_v10  ;;  %v519_v19 = vpop.f32.mrf.mxu0  ;;  %v685_v20 = vpop.f32.mrf.mxu1  ;;  %v778_v10 = vmul.f32 %v423_v7, %v257_v6 }
  0xfa   :  { %v831_v22 = vadd.f32 %v830_v16, %v816_v15  ;;  %v918_v23 = vmul.f32 %v519_v19, %v519_v19  ;;  %v881_v24 = vmul.f32 %v685_v20, %v519_v19  ;;  %v955_v27 = vmul.f32 %v685_v20, %v685_v20 }
  0xfb   :  { %v868_v26 = vadd.f32 %v867_v18, %v853_v17  ;;  %v1365_v28 = vpop.f32.mrf.mxu0  ;;  %v1405_v29 = vpop.f32.mrf.mxu1 }
  0xfc   :  { %v832_v31 = vrot.slane %v831_v22, 4  ;;  %v934_v41 = vadd.f32 %v919_v32, %v918_v23  ;;  %v897_v42 = vadd.f32 %v882_v35, %v881_v24  ;;  %v971_v43 = vadd.f32 %v956_v37, %v955_v27 }
  0xfd   :  { %v869_v36 = vrot.slane %v868_v26, 4  ;;  %v529_v38 = vpop.f32.mrf.mxu0  ;;  %v695_v39 = vpop.f32.mrf.mxu1  ;;  %v921_v52 = vmul.f32 %v1365_v28, %v1365_v28  ;;  %v884_v55 = vmul.f32 %v1405_v29, %v1365_v28  ;;  %v958_v63 = vmul.f32 %v1405_v29, %v1405_v29 }
  0xfe   :  { %v833_v40 = vadd.f32 %v832_v31, %v831_v22  ;;  %v920_v33 = vmul.f32 %v529_v38, %v529_v38  ;;  %v883_v44 = vmul.f32 %v695_v39, %v529_v38  ;;  %v957_v45 = vmul.f32 %v695_v39, %v695_v39 }
  0xff   :  { %v870_v34 = vadd.f32 %v869_v36, %v868_v26  ;;  %v1368_v46 = vpop.f32.mrf.mxu0  ;;  %v1408_v49 = vpop.f32.mrf.mxu1  ;;  %v793_v28 = vadd.f32 %v792_v14, %v778_v10  ;;  %v779_v36 = vmul.f32 %v1849_v62, %v1847_v61 }
 0x100   :  { %v834_v51 = vrot.slane %v833_v40, 2  ;;  %v935_v53 = vadd.f32 %v934_v41, %v920_v33  ;;  %v898_v56 = vadd.f32 %v897_v42, %v883_v44  ;;  %v972_v57 = vadd.f32 %v971_v43, %v957_v45 }
 0x101   :  { %v871_v54 = vrot.slane %v870_v34, 2  ;;  %v539_v58 = vpop.f32.mrf.mxu0  ;;  %v705_v59 = vpop.f32.mrf.mxu1  ;;  %v923_v15 = vmul.f32 %v1368_v46, %v1368_v46  ;;  %v886_v20 = vmul.f32 %v1408_v49, %v1368_v46  ;;  %v960_v21 = vmul.f32 %v1408_v49, %v1408_v49 }
 0x102   :  { %v922_v1 = vmul.f32 %v539_v58, %v539_v58  ;;  %v835_v2 = vadd.f32 %v834_v51, %v833_v40  ;;  %v936_v3 = vadd.f32 %v935_v53, %v921_v52  ;;  %v885_v4 = vmul.f32 %v705_v59, %v539_v58 }
 0x103   :  { %v899_v5 = vadd.f32 %v898_v56, %v884_v55  ;;  %v1371_v8 = vpop.f32.mrf.mxu0  ;;  %v1411_v9 = vpop.f32.mrf.mxu1  ;;  %v872_v11 = vadd.f32 %v871_v54, %v870_v34  ;;  %v959_v12 = vmul.f32 %v705_v59, %v705_v59  ;;  %v973_v13 = vadd.f32 %v972_v57, %v958_v63 }
 0x104   :  { %v937_v16 = vadd.f32 %v936_v3, %v922_v1  ;;  %v836_v48 = vrot.slane %v835_v2, 1  ;;  %v925_v29 = vmul.f32 %v1371_v8, %v1371_v8  ;;  %v888_v37 = vmul.f32 %v1411_v9, %v1371_v8 }
 0x105   :  { %v900_v17 = vadd.f32 %v899_v5, %v885_v4  ;;  %v549_v18 = vpop.f32.mrf.mxu0  ;;  %v715_v19 = vpop.f32.mrf.mxu1  ;;  %v974_v47 = vadd.f32 %v973_v13, %v959_v12  ;;  %v873_v26 = vrot.slane %v872_v11, 1  ;;  %v962_v40 = vmul.f32 %v1411_v9, %v1411_v9 }
 0x106   :  { %v924_v22 = vmul.f32 %v549_v18, %v549_v18  ;;  %v938_v23 = vadd.f32 %v937_v16, %v923_v15  ;;  %v887_v27 = vmul.f32 %v715_v19, %v549_v18  ;;  %v961_v7 = vmul.f32 %v715_v19, %v715_v19 }
 0x107   :  { %v1374_v24 = vpop.f32.mrf.mxu0  ;;  %v1414_v25 = vpop.f32.mrf.mxu1  ;;  %v901_v6 = vadd.f32 %v900_v17, %v886_v20  ;;  %v975_v31 = vadd.f32 %v974_v47, %v960_v21  ;;  %v837_v44 = vadd.f32 %v836_v48, %v835_v2  ;;  %v874_v45 = vadd.f32 %v873_v26, %v872_v11 }
 0x108   :  { %v939_v30 = vadd.f32 %v938_v23, %v924_v22  ;;  %v794_v50 = vadd.f32 %v793_v28, %v779_v36  ;;  %v927_v51 = vmul.f32 %v1374_v24, %v1374_v24  ;;  %v890_v61 = vmul.f32 %v1414_v25, %v1374_v24 }
 0x109   :  { %v559_v32 = vpop.f32.mrf.mxu0  ;;  %v725_v35 = vpop.f32.mrf.mxu1  ;;  %v902_v38 = vadd.f32 %v901_v6, %v887_v27  ;;  %v976_v41 = vadd.f32 %v975_v31, %v961_v7  ;;  %v964_v58 = vmul.f32 %v1414_v25, %v1414_v25  ;;  %v875_v2 = vmax.f32 %v837_v44, 1e-16 }
 0x10a   :  { %v926_v39 = vmul.f32 %v559_v32, %v559_v32  ;;  %v940_v42 = vadd.f32 %v939_v30, %v925_v29  ;;  %v889_v33 = vmul.f32 %v725_v35, %v559_v32  ;;  %v963_v49 = vmul.f32 %v725_v35, %v725_v35 }
 0x10b   :  { %v1377_v34 = vpop.f32.mrf.mxu0  ;;  %v1417_v43 = vpop.f32.mrf.mxu1  ;;  %v903_v46 = vadd.f32 %v902_v38, %v888_v37  ;;  %v977_v53 = vadd.f32 %v976_v41, %v962_v40  ;;  %v876_v4 = vmax.f32 %v874_v45, 1e-16  ;;  %v795_v8 = vrot.slane %v794_v50, 4 }
 0x10c   :  { %v941_v52 = vadd.f32 %v940_v42, %v926_v39  ;;  %v929_v9 = vmul.f32 %v1377_v34, %v1377_v34  ;;  %v892_v14 = vmul.f32 %v1417_v43, %v1377_v34  ;;  %v966_v15 = vmul.f32 %v1417_v43, %v1417_v43 }
 0x10d   :  { %v569_v54 = vpop.f32.mrf.mxu0  ;;  %v735_v55 = vpop.f32.mrf.mxu1  ;;  %v904_v62 = vadd.f32 %v903_v46, %v889_v33  ;;  %v978_v59 = vadd.f32 %v977_v53, %v963_v49  ;;  %v877_v22 = vmul.f32 %v876_v4, %v875_v2  ;;  %v796_v7 = vadd.f32 %v795_v8, %v794_v50 }
 0x10e   :  { %v928_v56 = vmul.f32 %v569_v54, %v569_v54  ;;  %v891_v57 = vmul.f32 %v735_v55, %v569_v54  ;;  %v942_v60 = vadd.f32 %v941_v52, %v927_v51  ;;  %v965_v63 = vmul.f32 %v735_v55, %v735_v55 }
 0x10f   :  { %v1380_v1 = vpop.f32.mrf.mxu0  ;;  %v1420_v3 = vpop.f32.mrf.mxu1  ;;  %v905_v5 = vadd.f32 %v904_v62, %v890_v61  ;;  %v979_v11 = vadd.f32 %v978_v59, %v964_v58  ;;  %1428 = vrsqrt.f32 %v877_v22  ;;  %v797_v40 = vrot.slane %v796_v7, 2 }
 0x110   :  { %v943_v10 = vadd.f32 %v942_v60, %v928_v56  ;;  %v931_v24 = vmul.f32 %v1380_v1, %v1380_v1  ;;  %v968_v28 = vmul.f32 %v1420_v3, %v1420_v3  ;;  %v894_v36 = vmul.f32 %v1420_v3, %v1380_v1 }
 0x111   :  { %v579_v12 = vpop.f32.mrf.mxu0  ;;  %v745_v13 = vpop.f32.mrf.mxu1  ;;  %v906_v16 = vadd.f32 %v905_v5, %v891_v57  ;;  %v980_v18 = vadd.f32 %v979_v11, %v965_v63  ;;  %v798_v46 = vadd.f32 %v797_v40, %v796_v7 }
 0x112   :  { %v930_v17 = vmul.f32 %v579_v12, %v579_v12  ;;  %v944_v19 = vadd.f32 %v943_v10, %v929_v9  ;;  %v893_v20 = vmul.f32 %v745_v13, %v579_v12  ;;  %v967_v47 = vmul.f32 %v745_v13, %v745_v13 }
 0x113   :  { %v1383_v48 = vpop.f32.mrf.mxu0  ;;  %v1423_v21 = vpop.f32.mrf.mxu1  ;;  %v907_v23 = vadd.f32 %v906_v16, %v892_v14  ;;  %v981_v26 = vadd.f32 %v980_v18, %v966_v15  ;;  %v799_v55 = vrot.slane %v798_v46, 1  ;;  %v999_v12 = vstv %s998_s5 }
 0x114   :  { %v945_v25 = vadd.f32 %v944_v19, %v930_v17  ;;  %v933_v37 = vmul.f32 %v1383_v48, %v1383_v48  ;;  %v970_v41 = vmul.f32 %v1423_v21, %v1423_v21  ;;  %v896_v52 = vmul.f32 %v1423_v21, %v1383_v48 }
 0x115   :  { %v589_v27 = vpop.f32.mrf.mxu0  ;;  %v755_v6 = vpop.f32.mrf.mxu1  ;;  %v908_v30 = vadd.f32 %v907_v23, %v893_v20  ;;  %v982_v31 = vadd.f32 %v981_v26, %v967_v47  ;;  %v800_v60 = vadd.f32 %v799_v55, %v798_v46 }
 0x116   :  { %v932_v29 = vmul.f32 %v589_v27, %v589_v27  ;;  %v946_v32 = vadd.f32 %v945_v25, %v931_v24  ;;  %v969_v35 = vmul.f32 %v755_v6, %v755_v6  ;;  %v895_v33 = vmul.f32 %v755_v6, %v589_v27 }
 0x117   :  { %v983_v39 = vadd.f32 %v982_v31, %v968_v28  ;;  %v909_v34 = vadd.f32 %v908_v30, %v894_v36 }
 0x118   :  { %v947_v38 = vadd.f32 %v946_v32, %v932_v29 }
 0x119   :  { %v984_v43 = vadd.f32 %v983_v39, %v969_v35  ;;  %v910_v50 = vadd.f32 %v909_v34, %v895_v33  ;;  %v1035_v34 = vand.u32 127, %v42_v0 }
 0x11a   :  { %v948_v42 = vadd.f32 %v947_v38, %v933_v37 }
 0x11b   :  { %v985_v45 = vadd.f32 %v984_v43, %v970_v41  ;;  %v911_v62 = vadd.f32 %v910_v50, %v896_v52  ;;  %vm1038_vm4 = vcmp.lt.s32.totalorder %v1035_v34, 16 }
 0x11c   :  { %v949_v44 = vrot.slane %v948_v42, 4  ;;  %v1429_v57 = vpop.eup %1428 }
 0x11d   :  { %v986_v51 = vrot.slane %v985_v45, 4  ;;  %v912_v1 = vrot.slane %v911_v62, 4  ;;  %v879_v5 = vmul.f32 %v1429_v57, %v800_v60 }
 0x11e   :  { %v950_v49 = vadd.f32 %v949_v44, %v948_v42 }
 0x11f   :  { %v987_v54 = vadd.f32 %v986_v51, %v985_v45  ;;  %v913_v8 = vadd.f32 %v912_v1, %v911_v62  ;;  %v880_v11 = vsub.f32 1.0, %v879_v5 }
 0x120   :  { %v951_v53 = vrot.slane %v950_v49, 2 }
 0x121   :  { %v988_v56 = vrot.slane %v987_v54, 2  ;;  %v914_v13 = vrot.slane %v913_v8, 2  ;;  %v1000_v14 = vmul.f32 %v999_v12, %v880_v11 }
 0x122   :  { %v952_v61 = vadd.f32 %v951_v53, %v950_v49 }
 0x123   :  { %v989_v59 = vadd.f32 %v988_v56, %v987_v54  ;;  %v915_v15 = vadd.f32 %v914_v13, %v913_v8  ;;  %v1002_v16 = vand.u32 2147483647, %v1000_v14  ;;  %v1001_v43 = vmin.f32 %v1000_v14, 0.0 }
 0x124   :  { %v953_v58 = vrot.slane %v952_v61, 1 }
 0x125   :  { %v990_v3 = vrot.slane %v989_v59, 1  ;;  %v916_v17 = vrot.slane %v915_v15, 1  ;;  %v1003_v18 = vsub.f32 0.0, %v1002_v16 }
 0x126   :  { %v954_v63 = vadd.f32 %v953_v58, %v952_v61 }
 0x127   :  { %v991_v4 = vadd.f32 %v990_v3, %v989_v59  ;;  %v917_v19 = vadd.f32 %v916_v17, %v915_v15  ;;  %v1004_v48 = vmul.f32 1.442695, %v1003_v18 }
 0x128   :  { %v992_v2 = vmax.f32 %v954_v63, 1e-16 }
 0x129   :  { %v993_v9 = vmax.f32 %v991_v4, 1e-16 }
 0x12b   :  { %v994_v10 = vmul.f32 %v993_v9, %v992_v2 }
 0x12d   :  { %1430 = vrsqrt.f32 %v994_v10 }
 0x12e   :  { %1432 = vpow2.f32 %v1004_v48 }
 0x13a   :  { %v1431_v20 = vpop.eup %1430 }
 0x13b   :  { %v996_v47 = vmul.f32 %v1431_v20, %v917_v19  ;;  %v1433_v27 = vpop.eup %1432 }
 0x13c   :  { %v1006_v6 = vadd.f32 1.0, %v1433_v27  ;;  %v1009_v29 = vmul.f32 -0.5, %v1433_v27  ;;  %v1012_v35 = vand.u32 2147483647, %v1433_v27 }
 0x13d   :  { %v997_v21 = vsub.f32 1.0, %v996_v47 }
 0x13e   :  { %v1010_v32 = vadd.f32 1.0, %v1009_v29  ;;  %vm1013_vm0 = vcmp.lt.f32.partialorder %v1012_v35, 0.0004427343 }
 0x13f   :  { %v1016_v22 = vsub.f32 0.0, %v997_v21 }
 0x140   :  { %v1011_v39 = vmul.f32 %v1433_v27, %v1010_v32 }
 0x141   :  { %v1017_v23 = vmul.f32 %v1016_v22, %v999_v12 }
 0x143   :  { %v1019_v24 = vand.u32 2147483647, %v1017_v23  ;;  %v1018_v44 = vmin.f32 %v1017_v23, 0.0 }
 0x145   :  { %v1020_v25 = vsub.f32 0.0, %v1019_v24 }
 0x147   :  { %v1021_v26 = vmul.f32 1.442695, %v1020_v25 }
 0x149   :  { %1434 = vpow2.f32 %v1021_v26 }
 0x14a   :  { %1436 = vlog2.f32 %v1006_v6 }
 0x156   :  { %v1435_v7 = vpop.eup %1434 }
 0x157   :  { %v1023_v28 = vadd.f32 1.0, %v1435_v7  ;;  %v1026_v30 = vmul.f32 -0.5, %v1435_v7  ;;  %v1437_v31 = vpop.eup %1436  ;;  %v1029_v38 = vand.u32 2147483647, %v1435_v7 }
 0x158   :  { %v1008_v36 = vmul.f32 0.6931472, %v1437_v31 }
 0x159   :  { %1438 = vlog2.f32 %v1023_v28  ;;  %v1027_v37 = vadd.f32 1.0, %v1026_v30  ;;  %vm1030_vm3 = vcmp.lt.f32.partialorder %v1029_v38, 0.0004427343 }
 0x15a   :  { %v1014_v41 = vsel %vm1013_vm0, %v1011_v39, %v1008_v36 }
 0x15b   :  { %v1028_v33 = vmul.f32 %v1435_v7, %v1027_v37  ;;  %v1015_v46 = vsub.f32 %v1001_v43, %v1014_v41 }
 0x166   :  { %v1439_v40 = vpop.eup %1438 }
 0x167   :  { %v1025_v42 = vmul.f32 0.6931472, %v1439_v40 }
 0x169   :  { %v1031_v45 = vsel %vm1030_vm3, %v1028_v33, %v1025_v42 }
 0x16a   :  { %v1032_v49 = vsub.f32 %v1018_v44, %v1031_v45 }
 0x16c   :  { %v1039_v50 = vadd.f32 %v1032_v49, %v1015_v46 }
 0x16e   :  { %v1040_v51 = vsel %vm1038_vm4, %v1039_v50, 0.0 }
 0x16f   :  { %v1042_v52 = vsel %vm1041_vm5, %v1040_v51, 0.0 }
 0x170   :  { %1043 = vadd.xlane.f32.xlu0 %v1042_v52 }
 0x1f9   :  { %v1044_v53 = vpop.xlane.xlu0 %1043 }
 0x1fa   :  { %v1045_v54 = vrot.slane %v1044_v53, 4 }
 0x1fc   :  { %v1046_v55 = vadd.f32 %v1045_v54, %v1044_v53 }
 0x1fe   :  { %v1047_v61 = vrot.slane %v1046_v55, 2 }
 0x200   :  { %v1048_v62 = vadd.f32 %v1047_v61, %v1046_v55 }
 0x202   :  { %v1049_v56 = vrot.slane %v1048_v62, 1 }
 0x204   :  { %v1050_v57 = vadd.f32 %v1049_v56, %v1048_v62 }
 0x206   :  { %1424 = vpush %v1050_v57 }
 0x237   :  { %s1425_s8 = spop %1424 }
 0x238   :  { %v1052_v0 = vstv %s1425_s8 }
 0x239   :  { %1053 = vst [vmem:[#allocation3] sm:$0x1] %v1052_v0 }
 0x23a   :  { %1451 = shalt.err (!%p1448_p4)
}
 0x23b   :  { %1063 = dma.vmem_to_hbm [thread:$0]  %s1061_s7, 16, %s1876_s6, [#allocation4]  }
 0x23c   :  { %1460 = dma.done.wait [#allocation4], 16  }
 0x23d   :  { %1461 = vsyncadd [#allocation4], 4294967280 }
 0x23e   :  { %1067 = vsyncpa [#allocation4], 1 }

</bundles_post_ra>
